<compile_context>
chip_gen: v7x
topology: tpu7x:2x2x1
jax: 0.10.0
libtpu: 0.0.40
codegen_flags: <defaults>
</compile_context>

<pallas_src>
import functools

import jax
import jax.numpy as jnp
import numpy as np
from jax.experimental import pallas as pl
from jax.experimental.pallas import tpu as pltpu


def pool_upsample_matrix(size, s):
    """Matrix equivalent of AvgPool1d(kernel=s, stride=s, floor mode) followed by
    nn.Upsample('nearest') back to `size` (PyTorch semantics)."""
    p = size // s                                  # pooled extent (floor mode)
    rows = np.arange(p)[:, None]
    cols = np.arange(size)[None, :]
    P = np.where((cols >= rows * s) & (cols < (rows + 1) * s), 1.0 / s, 0.0)  # (p, size)
    src = (np.arange(size) * p) // size            # nn.Upsample 'nearest' index map
    U = (np.arange(p)[None, :] == src[:, None]).astype(np.float64)            # (size, p)
    return jnp.asarray(U @ P, dtype=jnp.float32)                              # (size, size)


def _pick_tile_c(C):
    """Channel tile so the x block (TILE_C * H*W * 4B, double-buffered) stays well
    inside scoped VMEM on v5e/v6e/v7x.  Must divide C and be a multiple of 128
    (or equal C) to satisfy BlockSpec layout rules."""
    if C % 256 == 0:
        return 256
    if C % 128 == 0:
        return 128
    return C  # small / irregular C: single tile (block == full dim)


# ---------------------------------------------------------------------------
# Stage 1: channel-tiled reduction over C, all bins fused into one matmul.
#   z[n, i, :] = sum_c W[i, c] * x[n, c, :]        (x flattened to (N, C, H*W))
# grid = (N, C // TILE_C); channel axis is the reduction -> last + "arbitrary".
# ---------------------------------------------------------------------------
def channel_reduce_kernel(x_ref, w_ref, z_ref, acc_ref):
    # x_ref: (1, TILE_C, HW)  w_ref: (nb, TILE_C)  z_ref: (1, nb, HW)  acc: (nb, HW)
    k = pl.program_id(1)

    @pl.when(k == 0)
    def _init():
        acc_ref[...] = jnp.zeros_like(acc_ref)

    # Channel reduction as an MXU matmul; x is never scaled/materialized per bin.
    acc_ref[...] += jnp.dot(w_ref[...], x_ref[0],
                            preferred_element_type=jnp.float32)

    @pl.when(k == pl.num_programs(1) - 1)
    def _finalize():
        z_ref[0] = acc_ref[...]        # lane-dense (nb, H*W) store


# ---------------------------------------------------------------------------
# Stage 2: per-bin fused pool+upsample (two small matmuls) + bias.  Tiny work.
# ---------------------------------------------------------------------------
def spatial_kernel(z_ref, ah_ref, awt_ref, b_ref, o_ref, *, nb):
    # z_ref: (1, nb, H, W)  ah_ref: (nb, H, H)  awt_ref: (nb, W, W)
    # b_ref: SMEM (nb,)     o_ref: (1, nb, H, W)
    for i in range(nb):                              # nb is small & static: unrolled
        t = jnp.dot(ah_ref[i], z_ref[0, i], preferred_element_type=jnp.float32)
        y = jnp.dot(t, awt_ref[i], preferred_element_type=jnp.float32)
        o_ref[0, i] = y + b_ref[i]                   # scalar bias from SMEM


def pyramid_pooling_forward(x, weights, biases, bin_sizes):
    """weights: (num_bins, C), biases: (num_bins,).  Returns list of (N, 1, H, W)."""
    N, C, H, W = x.shape
    nb = len(bin_sizes)
    HW = H * W

    x = x.astype(jnp.float32)
    w = weights.astype(jnp.float32).reshape(nb, C)
    b = biases.astype(jnp.float32).reshape(nb)
    ah = jnp.stack([pool_upsample_matrix(H, s) for s in bin_sizes])       # (nb, H, H)
    awt = jnp.stack([pool_upsample_matrix(W, s).T for s in bin_sizes])    # (nb, W, W)

    tile_c = _pick_tile_c(C)
    assert C % tile_c == 0
    num_ct = C // tile_c

    # Free (outside-kernel) reshape to a lane-dense (C, H*W) layout for the matmul.
    x_flat = x.reshape(N, C, HW)

    z = pl.pallas_call(
        channel_reduce_kernel,
        out_shape=jax.ShapeDtypeStruct((N, nb, HW), jnp.float32),
        grid=(N, num_ct),
        in_specs=[
            pl.BlockSpec((1, tile_c, HW), lambda n, k: (n, k, 0)),
            pl.BlockSpec((nb, tile_c), lambda n, k: (0, k)),
        ],
        out_specs=pl.BlockSpec((1, nb, HW), lambda n, k: (n, 0, 0)),
        scratch_shapes=[pltpu.VMEM((nb, HW), jnp.float32)],
        compiler_params=pltpu.CompilerParams(
            dimension_semantics=("parallel", "arbitrary")),
    )(x_flat, w)

    z4 = z.reshape(N, nb, H, W)   # free reshape outside the kernel

    out = pl.pallas_call(
        functools.partial(spatial_kernel, nb=nb),
        out_shape=jax.ShapeDtypeStruct((N, nb, H, W), jnp.float32),
        grid=(N,),
        in_specs=[
            pl.BlockSpec((1, nb, H, W), lambda n: (n, 0, 0, 0)),
            pl.BlockSpec((nb, H, H), lambda n: (0, 0, 0)),
            pl.BlockSpec((nb, W, W), lambda n: (0, 0, 0)),
            pl.BlockSpec(memory_space=pltpu.MemorySpace.SMEM),   # bias scalars
        ],
        out_specs=pl.BlockSpec((1, nb, H, W), lambda n: (n, 0, 0, 0)),
        compiler_params=pltpu.CompilerParams(
            dimension_semantics=("parallel",)),
    )(z4, ah, awt, b)

    return [out[:, i:i + 1] for i in range(nb)]      # list of (N, 1, H, W)


def reference_forward(x, weights, biases, bin_sizes):
    """Pure-JAX mirror of the PyTorch forward, for verification."""
    N, C, H, W = x.shape
    outs = []
    for i, s in enumerate(bin_sizes):
        Hp, Wp = H // s, W // s
        xp = x[:, :, :Hp * s, :Wp * s].reshape(N, C, Hp, s, Wp, s).mean(axis=(3, 5))
        conv = jnp.einsum('nchw,c->nhw', xp, weights[i]) + biases[i]       # (N, Hp, Wp)
        hi = (jnp.arange(H) * Hp) // H
        wi = (jnp.arange(W) * Wp) // W
        outs.append(conv[:, hi][:, :, wi][:, None])                        # (N, 1, H, W)
    return outs


if __name__ == "__main__":
    # Small, deterministic setup consistent with the module.
    N, C, H, W = 2, 4, 16, 16
    bin_sizes = [1, 2, 3, 4]          # AvgPool2d kernel sizes (incl. a non-divisor)
    nb = len(bin_sizes)

    key = jax.random.PRNGKey(0)
    kx, kw, kb = jax.random.split(key, 3)
    x = jax.random.normal(kx, (N, C, H, W), dtype=jnp.float32)

    # Deterministic Conv2d(C, 1, 1) params per bin (PyTorch-style uniform range).
    bound = 1.0 / np.sqrt(C)
    weights = jax.random.uniform(kw, (nb, C), minval=-bound, maxval=bound,
                                 dtype=jnp.float32)
    biases = jax.random.uniform(kb, (nb,), minval=-bound, maxval=bound,
                                dtype=jnp.float32)

    context_maps = pyramid_pooling_forward(x, weights, biases, bin_sizes)
    context_maps = [jax.block_until_ready(m) for m in context_maps]

    ref_maps = reference_forward(x, weights, biases, bin_sizes)
    for got, ref in zip(context_maps, ref_maps):
        assert got.shape == (N, 1, H, W)
        np.testing.assert_allclose(np.asarray(got), np.asarray(ref),
                                   rtol=1e-5, atol=1e-5)

    print("KERNEL_OK")
</pallas_src>

<mosaic_0001>
module attributes {stable_mosaic.version = 11 : i64} {
  func.func @channel_reduce_kernel(%arg0: i32, %arg1: i32, %arg2: memref<1x4x256xf32, #tpu.memory_space<vmem>>, %arg3: memref<4x4xf32, #tpu.memory_space<vmem>>, %arg4: memref<1x4x256xf32, #tpu.memory_space<vmem>>, %arg5: memref<4x256xf32, #tpu.memory_space<vmem>>) attributes {dimension_semantics = [#tpu.dimension_semantics<parallel>, #tpu.dimension_semantics<arbitrary>], iteration_bounds = array<i64: 2, 1>, scalar_prefetch = 0 : i64, scratch_operands = 1 : i64, tpu.core_type = #tpu.core_type<tc>, window_params = [{transform_indices = @transform_0, window_bounds = array<i64: 1, 4, 256>}, {transform_indices = @transform_1, window_bounds = array<i64: 4, 4>}, {transform_indices = @transform_2, window_bounds = array<i64: 1, 4, 256>}]} {
    %c0_i32 = arith.constant 0 : i32
    %0 = arith.cmpi eq, %arg1, %c0_i32 : i32
    %1 = arith.extui %0 : i1 to i32
    %c0_i32_0 = arith.constant 0 : i32
    %2 = arith.cmpi ne, %1, %c0_i32_0 : i32
    scf.if %2 {
      %cst_11 = arith.constant 0.000000e+00 : f32
      %13 = vector.broadcast %cst_11 : f32 to vector<4x256xf32>
      %c0_12 = arith.constant 0 : index
      %c0_13 = arith.constant 0 : index
      %14 = vector.load %arg5[%c0_12, %c0_13] : memref<4x256xf32, #tpu.memory_space<vmem>>, vector<4x256xf32>
      tpu.vector_store %arg5[%c0_12, %c0_13], %13 {strides = array<i32>} : memref<4x256xf32, #tpu.memory_space<vmem>>, vector<4x256xf32>,
    } else {
    }
    %c0 = arith.constant 0 : index
    %c0_1 = arith.constant 0 : index
    %3 = vector.load %arg5[%c0, %c0_1] : memref<4x256xf32, #tpu.memory_space<vmem>>, vector<4x256xf32>
    %c0_2 = arith.constant 0 : index
    %c0_3 = arith.constant 0 : index
    %4 = vector.load %arg3[%c0_2, %c0_3] : memref<4x4xf32, #tpu.memory_space<vmem>>, vector<4x4xf32>
    %c0_4 = arith.constant 0 : index
    %c0_5 = arith.constant 0 : index
    %c0_6 = arith.constant 0 : index
    %5 = vector.load %arg2[%c0_4, %c0_5, %c0_6] : memref<1x4x256xf32, #tpu.memory_space<vmem>>, vector<1x4x256xf32>
    %6 = vector.shape_cast %5 : vector<1x4x256xf32> to vector<4x256xf32>
    %cst = arith.constant dense<0.000000e+00> : vector<4x256xf32>
    %7 = tpu.matmul %4, %6, %cst {dimension_numbers = #tpu.dot_dimension_numbers<[1], [0], [0], [1], [0, 0, 1, 1], [], []>} : vector<4x4xf32>, vector<4x256xf32>, vector<4x256xf32> -> vector<4x256xf32>
    %8 = arith.addf %3, %7 : vector<4x256xf32>
    %c0_7 = arith.constant 0 : index
    %c0_8 = arith.constant 0 : index
    %9 = vector.load %arg5[%c0_7, %c0_8] : memref<4x256xf32, #tpu.memory_space<vmem>>, vector<4x256xf32>
    tpu.vector_store %arg5[%c0_7, %c0_8], %8 {strides = array<i32>} : memref<4x256xf32, #tpu.memory_space<vmem>>, vector<4x256xf32>,
    %c0_i32_9 = arith.constant 0 : i32
    %10 = arith.cmpi eq, %arg1, %c0_i32_9 : i32
    %11 = arith.extui %10 : i1 to i32
    %c0_i32_10 = arith.constant 0 : i32
    %12 = arith.cmpi ne, %11, %c0_i32_10 : i32
    scf.if %12 {
      %c0_11 = arith.constant 0 : index
      %c0_12 = arith.constant 0 : index
      %13 = vector.load %arg5[%c0_11, %c0_12] : memref<4x256xf32, #tpu.memory_space<vmem>>, vector<4x256xf32>
      %c0_13 = arith.constant 0 : index
      %c0_14 = arith.constant 0 : index
      %c0_15 = arith.constant 0 : index
      %14 = vector.load %arg4[%c0_13, %c0_14, %c0_15] : memref<1x4x256xf32, #tpu.memory_space<vmem>>, vector<1x4x256xf32>
      %15 = vector.shape_cast %14 : vector<1x4x256xf32> to vector<4x256xf32>
      %16 = vector.shape_cast %13 : vector<4x256xf32> to vector<1x4x256xf32>
      tpu.vector_store %arg4[%c0_13, %c0_14, %c0_15], %16 {strides = array<i32>} : memref<1x4x256xf32, #tpu.memory_space<vmem>>, vector<1x4x256xf32>,
    } else {
    }
    return
  }
  func.func @transform_0(%arg0: i32, %arg1: i32) -> (i32, i32, i32) {
    %c0_i32 = arith.constant 0 : i32
    %c0_i32_0 = arith.constant 0 : i32
    return %arg0, %arg1, %c0_i32 : i32, i32, i32
  }
  func.func @transform_1(%arg0: i32, %arg1: i32) -> (i32, i32) {
    %c0_i32 = arith.constant 0 : i32
    %c0_i32_0 = arith.constant 0 : i32
    return %c0_i32, %arg1 : i32, i32
  }
  func.func @transform_2(%arg0: i32, %arg1: i32) -> (i32, i32, i32) {
    %c0_i32 = arith.constant 0 : i32
    %c0_i32_0 = arith.constant 0 : i32
    %c0_i32_1 = arith.constant 0 : i32
    return %arg0, %c0_i32, %c0_i32_0 : i32, i32, i32
  }
}

</mosaic_0001>

<bundles_post_ra>
// kernel: tpu_custom_call.1
= control target key start
LH: loop header
LB: loop body
LE: loop exit
PB: predicated region body
PF: predicated region fallthrough
CT: control target
= control target key end

     0   :  { %7 = vsyncpa [#allocation4], 0  ;;  %s883_s0 = inlined_call_operand.hbm [shape: f32[2,4,256], index: 0, kind: input, shape index: {}]   ;;  %s884_s1 = inlined_call_operand.hbm [shape: f32[4,4], index: 1, kind: input, shape index: {}]   ;;  %s885_s2 = inlined_call_operand.hbm [shape: f32[2,4,256], index: 2, kind: output, shape index: {}]  }
   0x1   :  { %9 = vsyncpa [#allocation4 + $0x1], 0 }
   0x2   :  { %10 = vsyncpa [#allocation7], 0 }
   0x3   :  { %11 = vsyncpa [#allocation5], 0 }
   0x4   :  { %13 = vsyncpa [#allocation5 + $0x1], 0  ;;  %s667_s9 = smov 0   ;;  %s669_s10 = smov 0  }
   0x5   :  { %s671_s11 = smov 0   ;;  %s673_s12 = smov 0  }
   0x6   :  { %s675_s13 = smov 0   ;;  %s677_s14 = smov 0  }
   0x7 LB: > { %s405_s15 = sadd.s32 4294967295, %s646_s14   ;;  %s406_s16 = sadd.s32 4294967294, %s646_s14   ;;  %s646_s14 = sphi %s677_s14, %s19_s14   ;;  %s642_s13 = sphi %s675_s13, %s910_s13   ;;  %s638_s12 = sphi %s673_s12, %s909_s12   ;;  %s634_s11 = sphi %s671_s11, %s908_s11   ;;  %s630_s10 = sphi %s669_s10, %s907_s10   ;;  %s626_s9 = sphi %s667_s9, %s906_s9  }
   0x8   : > { %p53_p0 = scmp.ne.s32.totalorder %s630_s10, %s626_s9  ;;  %p701_p1 = scmp.eq.s32.totalorder %s405_s15, 0 }
   0x9   : > { %p705_p2 = scmp.eq.s32.totalorder %s405_s15, 1  ;;  %p109_p3 = scmp.eq.s32.totalorder %s406_s16, 1 }
   0xa   : > { %s890_s17 = scalar_select %p701_p1, 1, 0 }
   0xb   : > { %s891_s18 = scalar_select %p705_p2, 1, 0 }
   0xc   : > { %p711_p4 = por %p701_p1, %p53_p0  ;;  %p407_p5 = scmp.ge.s32.totalorder %s646_s14, 1 }
   0xd   : > { %p716_p6 = por %p109_p3, %p53_p0  ;;  %p116_p7 = scmp.lt.s32.totalorder %s646_s14, 3 }
   0xe   : > { %s892_s19 = scalar_select %p711_p4, 1, 0 }
   0xf   : > { %s893_s20 = scalar_select %p716_p6, 1, 0 }
  0x10   : > { %p721_p8 = pnand %p407_p5, %p116_p7  ;;  %s648_s22 = smov [#allocation6]  }
  0x11   : > { %s131_s23 = sshll.u32 %s648_s22, 4  ;;  %s31_s25 = sadd.s32 1, %s642_s13  ;;  %s132_s23 = int_to_ptr.vmem [resolvable:$true] %s131_s23 }
  0x12   : > { %s894_s21 = scalar_select %p721_p8, 1, 0 }
  0x13   : > { %p435_p10 = pneg %p721_p8  ;;  %s40_s26 = sadd.s32 1, %s634_s11 }
  0x14   : > { %p736_p12 = scmp.ge.s32.totalorder %s31_s25, 2  ;;  %s502_s30 = scalar_lea.hbm %s884_s1, 64 }
  0x15   : > { %p730_p11 = pnand %p435_p10, %p701_p1  ;;  %p503_p13 = scmp.ne.s32.totalorder %s884_s1, %s502_s30 }
  0x16   : > { %s896_s27 = scalar_select %p736_p12, 1, 0 }
  0x17   : > { %p504_p0 = pneg %p730_p11  ;;  %p509_p7 = scmp.lt.u32.totalorder %s502_s30, %s884_s1 }
  0x19   : > { %p505_p3 = pnand %p504_p0, %p503_p13 }
  0x1b   : > { %p506_p5 = pneg %p505_p3 }
  0x1d   : > { %p511_p10 = pnand %p509_p7, %p506_p5 }
  0x1f   : > { %514 = shalt.err (!%p511_p10)
}
  0x20   : > { %s515_s7 = scalar_lea.vmem %s132_s23, 64  ;;  %p523_p4 = scmp.lt.s32.totalorder %s132_s23, %s132_s23 }
  0x21   : > { %p516_p9 = scmp.ne.s32.totalorder %s132_s23, %s515_s7  ;;  %p524_p8 = scmp.lt.s32.totalorder %s515_s7, %s515_s7 }
  0x23   : > { %p518_p6 = pnand %p516_p9, %p504_p0  ;;  %p525_p2 = por %p524_p8, %p523_p4 }
  0x25   : > { %p519_p1 = pneg %p518_p6 }
  0x27   : > { %p526_p12 = pnand %p525_p2, %p519_p1 }
  0x29   : > { %529 = shalt.err (!%p526_p12)
}
  0x2a   : > { %438 = dma.hbm_to_vmem [thread:$0]  (!%p730_p11), %s884_s1, 64, %s132_s23, [#allocation7]  }
  0x2b   : > { %p897_p4 = scmp.ne.s32.totalorder %s896_s27, 0  ;;  %p47_p1 = scmp.ne.s32.totalorder %s634_s11, %s630_s10 }
  0x2c   : > { %p48_p2 = scmp.eq.s32.totalorder %s646_s14, 0  ;;  %p448_p6 = scmp.lt.s32.totalorder %s646_s14, 2 }
  0x2d   : > { %s912_s25 = smov (%p897_p4, %s31_s25), 0  ;;  %p898_p12 = scmp.ne.s32.totalorder %s891_s18, 0 }
  0x2e   : > { %s35_s16 = ssub.s32 %s642_s13, %s912_s25  ;;  %p49_p9 = por %p48_p2, %p47_p1 }
  0x2f   : > { %p38_p8 = scmp.eq.s32.totalorder %s35_s16, 0  ;;  %p768_p13 = por %p898_p12, %p47_p1 }
  0x30   : > { %s142_s24 = sand.u32 1, %s634_s11   ;;  %s425_s27 = sshll.u32 %s642_s13, 7 }
  0x31   : > { %s776_s28 = scalar_select %p38_p8, %s634_s11, %s40_s26  }
  0x32   : > { %s410_s23 = sshll.u32 %s142_s24, 3  ;;  %s782_s3 = scalar_lea.hbm %s883_s0, %s425_s27 }
  0x33   : > { %s146_s18 = scalar_lea.vmem [#allocation3], %s410_s23  ;;  %p786_p11 = pnand %p448_p6, %p49_p9 }
  0x34   : > { %s156_s4 = sshll.u32 %s146_s18, 4  ;;  %s143_s26 = scalar_lea.sflag [#allocation4], %s142_s24  ;;  %s784_s4 = int_to_ptr.vmem [resolvable:$true] %s156_s4 }
  0x35   : > { %s530_s6 = scalar_lea.hbm %s782_s3, 128  ;;  %p532_p3 = pneg %p786_p11 }
  0x36   : > { %p531_p0 = scmp.ne.s32.totalorder %s782_s3, %s530_s6  ;;  %s535_s15 = scalar_lea.hbm %s883_s0, 256 }
  0x37   : > { %p536_p10 = scmp.lt.u32.totalorder %s782_s3, %s883_s0  ;;  %p537_p4 = scmp.lt.u32.totalorder %s535_s15, %s530_s6 }
  0x38   : > { %p533_p5 = pnand %p532_p3, %p531_p0  ;;  %p539_p2 = scmp.lt.u32.totalorder %s530_s6, %s782_s3 }
  0x39   : > { %p538_p1 = por %p537_p4, %p536_p10 }
  0x3a   : > { %p534_p7 = pneg %p533_p5 }
  0x3b   : > { %p540_p6 = por %p539_p2, %p538_p1 }
  0x3d   : > { %p541_p8 = pnand %p540_p6, %p534_p7 }
  0x3f   : > { %544 = shalt.err (!%p541_p8)
}
  0x40   : > { %s545_s24 = scalar_lea.vmem %s784_s4, 128  ;;  %s649_s27 = smov [#allocation3]  }
  0x41   : > { %p546_p9 = scmp.ne.s32.totalorder %s784_s4, %s545_s24  ;;  %s550_s29 = sshll.u32 %s649_s27, 4  ;;  %s551_s29 = int_to_ptr.vmem [resolvable:$false] %s550_s29 }
  0x42   : > { %s552_s30 = scalar_lea.vmem %s551_s29, 256  ;;  %p553_p5 = scmp.lt.s32.totalorder %s784_s4, %s551_s29 }
  0x43   : > { %p548_p12 = pnand %p546_p9, %p532_p3  ;;  %p554_p10 = scmp.lt.s32.totalorder %s552_s30, %s545_s24 }
  0x45   : > { %p549_p0 = pneg %p548_p12  ;;  %p555_p4 = por %p554_p10, %p553_p5 }
  0x47   : > { %p556_p1 = pnand %p555_p4, %p549_p0 }
  0x49   : > { %559 = shalt.err (!%p556_p1)
}
  0x4a   : > { %442 = dma.hbm_to_vmem [thread:$0]  (!%p786_p11), %s782_s3, 128, %s784_s4, %s143_s26  }
  0x4b   : > { %p901_p7 = scmp.ne.s32.totalorder %s894_s21, 0 }
  0x4c   : > { %s818_s18 = sand.u32 (!%p901_p7), 1, %s630_s10   ;;  %p902_p3 = scmp.ne.s32.totalorder (!%p901_p7), %s892_s19, 0 }
  0x4d   : > { %165 = sbr.rel (%p901_p7) target bundleno = 322 (0x142), region = 28  ;;  %s414_s6 = sshll.u32 (!%p901_p7), %s818_s18, 3 }
  0x4e   : > { %s168_s7 = scalar_lea.sflag (!%p901_p7), [#allocation4], %s818_s18  ;;  %s171_s8 = scalar_lea.vmem (!%p901_p7), [#allocation3], %s414_s6 }
  0x54   : > { %613 = dma.done.wait (%p902_p3), %s168_s7, 128  }
  0x55   : > { %615 = vsyncadd (%p902_p3), %s168_s7, 4294967168  ;;  %p903_p2 = scmp.ne.s32.totalorder %s890_s17, 0 }
  0x57   : > { %617 = dma.done.wait (%p903_p2), [#allocation7], 64  }
  0x58   : > { %619 = vsyncadd (%p903_p2), [#allocation7], 4294967232  ;;  %v650_v0 = vmov 0.0   ;;  %v203_v1 = vld [vmem:[%s171_s8] sm:$0xff]  ;;  %vm210_vm0 = vcmask 1043456   ;;  %vm206_vm1 = vcmask 31744  }
  0x59   : > { %279 = vmatprep.mubr.f32.mxu0 %v650_v0  ;;  %v205_v2 = vcombine.high %v203_v1, %v203_v1  ;;  %v202_v3 = vld [vmem:[#allocation6] sm:$0xf]  ;;  %s426_s19 = sshll.u32 %s638_s12, 7  ;;  %s195_s21 = scalar_lea.vmem [#allocation8], %s414_s6 }
  0x5a   : > { %s312_s3 = sshll.u32 %s195_s21, 4  ;;  %s834_s5 = scalar_lea.hbm %s885_s2, %s426_s19  ;;  %s836_s3 = int_to_ptr.vmem [resolvable:$true] %s312_s3 }
  0x5b   : > { %417 = vmatprep.subr.msk.mxu0 %vm210_vm0, %v205_v2  ;;  %s298_s26 = scalar_lea.sflag [#allocation5], %s818_s18  ;;  %s560_s15 = scalar_lea.vmem %s836_s3, 128 }
  0x5c   : > { %418 = vmatpush1.msk.msra.mxu0 %vm210_vm0, %v203_v1  ;;  %p561_p11 = scmp.ne.s32.totalorder %s836_s3, %s560_s15  ;;  %s651_s12 = smov [#allocation8]  }
  0x5d   : > { %419 = vmatmul.mubr.msk.f32.vlgmr.msra.gmra.mrb[0].mxu0 %vm206_vm1, %v202_v3  ;;  %s564_s16 = sshll.u32 %s651_s12, 4  ;;  %s565_s16 = int_to_ptr.vmem [resolvable:$false] %s564_s16 }
  0x5e   : > { %p562_p6 = pnand %p561_p11, %p768_p13  ;;  %s566_s23 = scalar_lea.vmem %s565_s16, 256 }
  0x5f   : > { %p567_p9 = scmp.lt.s32.totalorder %s836_s3, %s565_s16  ;;  %p568_p12 = scmp.lt.s32.totalorder %s566_s23, %s560_s15 }
  0x60   : > { %p563_p8 = pneg %p562_p6 }
  0x61   : > { %p569_p0 = por %p568_p12, %p567_p9 }
  0x63   : > { %p570_p5 = pnand %p569_p0, %p563_p8 }
 0x130   : > { %v281_v4 = vpop.f32.mrb[0].mxu0 }
 0x131   : > { %v283_v5 = vpop.f32.mrb[1].mxu0 }
 0x132   : > { %v288_v6 = vcombine.low %v281_v4, %v283_v5 }
 0x134   : > { %296 = vst [vmem:[%s195_s21] sm:$0xff] %v288_v6 }
 0x135   : > { %573 = shalt.err (!%p570_p5)
}
 0x136   : > { %s574_s24 = scalar_lea.hbm %s834_s5, 128  ;;  %s578_s30 = scalar_lea.hbm %s885_s2, 256 }
 0x137   : > { %p575_p10 = scmp.ne.s32.totalorder %s834_s5, %s574_s24  ;;  %p579_p7 = scmp.lt.u32.totalorder %s834_s5, %s885_s2 }
 0x138   : > { %p580_p3 = scmp.lt.u32.totalorder %s578_s30, %s574_s24  ;;  %p582_p11 = scmp.lt.u32.totalorder %s574_s24, %s834_s5 }
 0x139   : > { %p576_p4 = pnand %p575_p10, %p768_p13 }
 0x13a   : > { %p581_p2 = por %p580_p3, %p579_p7 }
 0x13b   : > { %p577_p1 = pneg %p576_p4 }
 0x13c   : > { %p583_p6 = por %p582_p11, %p581_p2 }
 0x13e   : > { %p584_p8 = pnand %p583_p6, %p577_p1 }
 0x140   : > { %587 = shalt.err (!%p584_p8)
}
 0x141   : > { %433 = dma.vmem_to_hbm [thread:$0]  (%p768_p13), %s836_s3, 128, %s834_s5, %s298_s26  }
 0x142 PF: > { %s324_s7 = sand.u32 1, %s626_s9   ;;  %p904_p9 = scmp.ne.s32.totalorder %s893_s20, 0 }
 0x143   : > { %p905_p12 = scmp.ge.s32.totalorder %s646_s14, 2  ;;  %s325_s8 = scalar_lea.sflag [#allocation5], %s324_s7 }
 0x145   : > { %p444_p0 = pnand %p905_p12, %p904_p9 }
 0x147   : > { %621 = dma.done.wait (!%p444_p0), %s325_s8, 128  }
 0x148   : > { %623 = vsyncadd (!%p444_p0), %s325_s8, 4294967168  ;;  %s19_s14 = sadd.s32 1, %s646_s14   ;;  %s906_s9 = smov %s630_s10 }
 0x149   : > { %p16_p5 = scmp.ge.s32.totalorder %s19_s14, 4   ;;  %s907_s10 = smov %s634_s11 }
 0x14a   : > { %s908_s11 = smov %s776_s28  ;;  %s909_s12 = smov %s642_s13 }
 0x14b   : > { %s910_s13 = smov %s912_s25  ;;  %18 = sbr.rel (!%p16_p5) target bundleno = 7 (0x7), region = 86 }
 0x152   :  { %330 = vsyncpa [#allocation4], 1 }
 0x153   :  { %332 = vsyncpa [#allocation4 + $0x1], 1 }
 0x154   :  { %333 = vsyncpa [#allocation7], 1 }
 0x155   :  { %334 = vsyncpa [#allocation5], 1 }
 0x156   :  { %336 = vsyncpa [#allocation5 + $0x1], 1 }

</bundles_post_ra>
